<compile_context>
chip_gen: v7x
topology: tpu7x:2x2x1
jax: 0.10.0
libtpu: 0.0.40
codegen_flags: <defaults>
</compile_context>

<pallas_src>
import functools

import jax
import jax.numpy as jnp
from jax.experimental import pallas as pl
from jax.experimental.pallas import tpu as pltpu

LANES = 128              # vreg lane width
SUBLANES = 8             # vreg sublane rows
MAX_BLOCK_ROWS = 8192    # 8192*128*4B = 4 MiB per f32 input buffer per step
NUM_CORE_SPLITS = 2      # leading "parallel" axis -> both TensorCores on v7x


def _iou_sums_kernel(block_rows, rows_per_core, needs_mask,
                     x_ref, t_ref, acc_ref):
    """Accumulate per-core (intersection, total) partials into a (2, 8, 128) slab."""
    i = pl.program_id(1)

    @pl.when(i == 0)
    def _():
        acc_ref[...] = jnp.zeros_like(acc_ref)

    x = x_ref[...].astype(jnp.float32)
    t = t_ref[...].astype(jnp.float32)

    # sigmoid(x) = 0.5 * (tanh(x/2) + 1): single EUP transcendental per element.
    s = 0.5 * (jnp.tanh(0.5 * x) + 1.0)
    prod = s * t
    tot = s + t

    def accumulate(p, q):
        # Fold the (block_rows, 128) tile down to one (8, 128) vreg using
        # leading-axis VPU adds only (keeps (8,128) tiles intact).  The single
        # cross-lane reduction happens in the wrapper epilogue.
        p8 = p.reshape(block_rows // SUBLANES, SUBLANES, LANES).sum(axis=0)
        q8 = q.reshape(block_rows // SUBLANES, SUBLANES, LANES).sum(axis=0)
        acc_ref[0, :, :] += p8
        acc_ref[1, :, :] += q8

    if needs_mask:
        # Only the last grid step per core can overhang the per-core row range.
        # Keep the iota/compare/select off the hot path of all earlier steps.
        last = pl.num_programs(1) - 1

        @pl.when(i != last)
        def _():
            accumulate(prod, tot)

        @pl.when(i == last)
        def _():
            row = jax.lax.broadcasted_iota(jnp.int32, (block_rows, LANES), 0)
            valid = (i * block_rows + row) < rows_per_core
            # Select (not multiply): garbage / NaN in the overhang is discarded.
            accumulate(jnp.where(valid, prod, 0.0), jnp.where(valid, tot, 0.0))
    else:
        accumulate(prod, tot)


def iou_loss(inputs, targets, smooth=1.0):
    """Pallas implementation of IoULoss.forward (soft IoU loss over all elems)."""
    x = inputs.reshape(-1)
    t = targets.reshape(-1)
    n = x.shape[0]

    chunk = SUBLANES * LANES                 # 1024 elements = one (8,128) vreg
    n_main = (n // chunk) * chunk            # exactly-tiling prefix; no pre-pad copy
    intersection = jnp.float32(0.0)
    total = jnp.float32(0.0)

    if n_main:
        rows = n_main // LANES               # multiple of 8
        if rows % (NUM_CORE_SPLITS * SUBLANES) == 0:
            n_split = NUM_CORE_SPLITS        # even, 8-aligned split across cores
        else:
            n_split = 1
        rows_per_core = rows // n_split
        block_rows = min(MAX_BLOCK_ROWS, rows_per_core)
        steps = pl.cdiv(rows_per_core, block_rows)
        needs_mask = (steps * block_rows) != rows_per_core

        x_main = x[:n_main].reshape(n_split, rows_per_core, LANES)
        t_main = t[:n_main].reshape(n_split, rows_per_core, LANES)

        in_spec = pl.BlockSpec((None, block_rows, LANES), lambda c, i: (c, i, 0))
        out_spec = pl.BlockSpec((None, 2, SUBLANES, LANES), lambda c, i: (c, 0, 0, 0))

        acc = pl.pallas_call(
            functools.partial(
                _iou_sums_kernel, block_rows, rows_per_core, needs_mask),
            out_shape=jax.ShapeDtypeStruct(
                (n_split, 2, SUBLANES, LANES), jnp.float32),
            grid=(n_split, steps),
            in_specs=[in_spec, in_spec],
            out_specs=out_spec,
            compiler_params=pltpu.CompilerParams(
                dimension_semantics=("parallel", "arbitrary"),
                vmem_limit_bytes=32 * 1024 * 1024,
            ),
        )(x_main, t_main)

        intersection = jnp.sum(acc[:, 0])
        total = jnp.sum(acc[:, 1])

    n_tail = n - n_main
    if n_tail:
        # Sub-1024-element tail: tiny, handled directly in the wrapper.
        xt = x[n_main:].astype(jnp.float32)
        tt = t[n_main:].astype(jnp.float32)
        st = jax.nn.sigmoid(xt)
        intersection = intersection + jnp.sum(st * tt)
        total = total + jnp.sum(st + tt)

    union = total - intersection
    iou = (intersection + smooth) / (union + smooth)
    return 1.0 - iou


def _reference_iou_loss(inputs, targets, smooth=1.0):
    s = jax.nn.sigmoid(inputs.astype(jnp.float32)).reshape(-1)
    t = targets.astype(jnp.float32).reshape(-1)
    intersection = jnp.sum(s * t)
    total = jnp.sum(s + t)
    union = total - intersection
    return 1.0 - (intersection + smooth) / (union + smooth)


if __name__ == "__main__":
    key = jax.random.PRNGKey(0)
    k1, k2 = jax.random.split(key)

    # Small shapes consistent with a segmentation logits/targets pair (NCHW).
    B, C, H, W = 2, 4, 16, 16
    logits = jax.random.normal(k1, (B, C, H, W), dtype=jnp.float32)
    targets = (jax.random.uniform(k2, (B, C, H, W)) > 0.5).astype(jnp.float32)

    loss = iou_loss(logits, targets, smooth=1.0)
    jax.block_until_ready(loss)

    ref = _reference_iou_loss(logits, targets, smooth=1.0)
    assert jnp.allclose(loss, ref, rtol=1e-5, atol=1e-5), (loss, ref)

    print("KERNEL_OK")
</pallas_src>

<mosaic_0001>
module attributes {stable_mosaic.version = 11 : i64} {
  func.func @_iou_sums_kernel(%arg0: i32, %arg1: i32, %arg2: memref<1x8x128xf32, #tpu.memory_space<vmem>>, %arg3: memref<1x8x128xf32, #tpu.memory_space<vmem>>, %arg4: memref<1x2x8x128xf32, #tpu.memory_space<vmem>>) attributes {dimension_semantics = [#tpu.dimension_semantics<parallel>, #tpu.dimension_semantics<arbitrary>], iteration_bounds = array<i64: 2, 1>, scalar_prefetch = 0 : i64, scratch_operands = 0 : i64, tpu.core_type = #tpu.core_type<tc>, window_params = [{transform_indices = @transform_0, window_bounds = array<i64: 1, 8, 128>}, {transform_indices = @transform_1, window_bounds = array<i64: 1, 8, 128>}, {transform_indices = @transform_2, window_bounds = array<i64: 1, 2, 8, 128>}]} {
    %c0_i32 = arith.constant 0 : i32
    %0 = arith.cmpi eq, %arg1, %c0_i32 : i32
    %1 = arith.extui %0 : i1 to i32
    %c0_i32_0 = arith.constant 0 : i32
    %2 = arith.cmpi ne, %1, %c0_i32_0 : i32
    scf.if %2 {
      %cst_25 = arith.constant 0.000000e+00 : f32
      %32 = vector.broadcast %cst_25 : f32 to vector<2x8x128xf32>
      %c0_26 = arith.constant 0 : index
      %c0_27 = arith.constant 0 : index
      %c0_28 = arith.constant 0 : index
      %c0_29 = arith.constant 0 : index
      %33 = vector.load %arg4[%c0_26, %c0_27, %c0_28, %c0_29] : memref<1x2x8x128xf32, #tpu.memory_space<vmem>>, vector<1x2x8x128xf32>
      %34 = vector.shape_cast %33 : vector<1x2x8x128xf32> to vector<2x8x128xf32>
      %35 = vector.shape_cast %32 : vector<2x8x128xf32> to vector<1x2x8x128xf32>
      tpu.vector_store %arg4[%c0_26, %c0_27, %c0_28, %c0_29], %35 {strides = array<i32>} : memref<1x2x8x128xf32, #tpu.memory_space<vmem>>, vector<1x2x8x128xf32>,
    } else {
    }
    %c0 = arith.constant 0 : index
    %c0_1 = arith.constant 0 : index
    %c0_2 = arith.constant 0 : index
    %3 = vector.load %arg2[%c0, %c0_1, %c0_2] : memref<1x8x128xf32, #tpu.memory_space<vmem>>, vector<1x8x128xf32>
    %4 = vector.shape_cast %3 : vector<1x8x128xf32> to vector<8x128xf32>
    %c0_3 = arith.constant 0 : index
    %c0_4 = arith.constant 0 : index
    %c0_5 = arith.constant 0 : index
    %5 = vector.load %arg3[%c0_3, %c0_4, %c0_5] : memref<1x8x128xf32, #tpu.memory_space<vmem>>, vector<1x8x128xf32>
    %6 = vector.shape_cast %5 : vector<1x8x128xf32> to vector<8x128xf32>
    %cst = arith.constant 5.000000e-01 : f32
    %7 = vector.broadcast %cst : f32 to vector<8x128xf32>
    %8 = arith.mulf %7, %4 : vector<8x128xf32>
    %9 = math.tanh %8 : vector<8x128xf32>
    %cst_6 = arith.constant 1.000000e+00 : f32
    %10 = vector.broadcast %cst_6 : f32 to vector<8x128xf32>
    %11 = arith.addf %9, %10 : vector<8x128xf32>
    %cst_7 = arith.constant 5.000000e-01 : f32
    %12 = vector.broadcast %cst_7 : f32 to vector<8x128xf32>
    %13 = arith.mulf %12, %11 : vector<8x128xf32>
    %14 = arith.mulf %13, %6 : vector<8x128xf32>
    %15 = arith.addf %13, %6 : vector<8x128xf32>
    %16 = vector.shape_cast %14 : vector<8x128xf32> to vector<1x8x128xf32>
    %cst_8 = arith.constant dense<0.000000e+00> : vector<8x128xf32>
    %17 = vector.multi_reduction <add>, %16, %cst_8 [0] : vector<1x8x128xf32> to vector<8x128xf32>
    %18 = vector.shape_cast %15 : vector<8x128xf32> to vector<1x8x128xf32>
    %cst_9 = arith.constant dense<0.000000e+00> : vector<8x128xf32>
    %19 = vector.multi_reduction <add>, %18, %cst_9 [0] : vector<1x8x128xf32> to vector<8x128xf32>
    %c0_10 = arith.constant 0 : index
    %c0_11 = arith.constant 0 : index
    %c0_12 = arith.constant 0 : index
    %c0_13 = arith.constant 0 : index
    %20 = vector.load %arg4[%c0_10, %c0_11, %c0_12, %c0_13] : memref<1x2x8x128xf32, #tpu.memory_space<vmem>>, vector<1x1x8x128xf32>
    %21 = vector.shape_cast %20 : vector<1x1x8x128xf32> to vector<8x128xf32>
    %22 = arith.addf %21, %17 : vector<8x128xf32>
    %c0_14 = arith.constant 0 : index
    %c0_15 = arith.constant 0 : index
    %c0_16 = arith.constant 0 : index
    %c0_17 = arith.constant 0 : index
    %23 = vector.load %arg4[%c0_14, %c0_15, %c0_16, %c0_17] : memref<1x2x8x128xf32, #tpu.memory_space<vmem>>, vector<1x1x8x128xf32>
    %24 = vector.shape_cast %23 : vector<1x1x8x128xf32> to vector<8x128xf32>
    %25 = vector.shape_cast %22 : vector<8x128xf32> to vector<1x1x8x128xf32>
    tpu.vector_store %arg4[%c0_14, %c0_15, %c0_16, %c0_17], %25 {strides = array<i32>} : memref<1x2x8x128xf32, #tpu.memory_space<vmem>>, vector<1x1x8x128xf32>,
    %c0_18 = arith.constant 0 : index
    %c1 = arith.constant 1 : index
    %c0_19 = arith.constant 0 : index
    %c0_20 = arith.constant 0 : index
    %26 = vector.load %arg4[%c0_18, %c1, %c0_19, %c0_20] : memref<1x2x8x128xf32, #tpu.memory_space<vmem>>, vector<1x1x8x128xf32>
    %27 = vector.shape_cast %26 : vector<1x1x8x128xf32> to vector<8x128xf32>
    %28 = arith.addf %27, %19 : vector<8x128xf32>
    %c0_21 = arith.constant 0 : index
    %c1_22 = arith.constant 1 : index
    %c0_23 = arith.constant 0 : index
    %c0_24 = arith.constant 0 : index
    %29 = vector.load %arg4[%c0_21, %c1_22, %c0_23, %c0_24] : memref<1x2x8x128xf32, #tpu.memory_space<vmem>>, vector<1x1x8x128xf32>
    %30 = vector.shape_cast %29 : vector<1x1x8x128xf32> to vector<8x128xf32>
    %31 = vector.shape_cast %28 : vector<8x128xf32> to vector<1x1x8x128xf32>
    tpu.vector_store %arg4[%c0_21, %c1_22, %c0_23, %c0_24], %31 {strides = array<i32>} : memref<1x2x8x128xf32, #tpu.memory_space<vmem>>, vector<1x1x8x128xf32>,
    return
  }
  func.func @transform_0(%arg0: i32, %arg1: i32) -> (i32, i32, i32) {
    %c0_i32 = arith.constant 0 : i32
    %c0_i32_0 = arith.constant 0 : i32
    return %arg0, %arg1, %c0_i32 : i32, i32, i32
  }
  func.func @transform_1(%arg0: i32, %arg1: i32) -> (i32, i32, i32) {
    %c0_i32 = arith.constant 0 : i32
    %c0_i32_0 = arith.constant 0 : i32
    return %arg0, %arg1, %c0_i32 : i32, i32, i32
  }
  func.func @transform_2(%arg0: i32, %arg1: i32) -> (i32, i32, i32, i32) {
    %c0_i32 = arith.constant 0 : i32
    %c0_i32_0 = arith.constant 0 : i32
    %c0_i32_1 = arith.constant 0 : i32
    %c0_i32_2 = arith.constant 0 : i32
    return %arg0, %c0_i32, %c0_i32_0, %c0_i32_1 : i32, i32, i32, i32
  }
}

</mosaic_0001>

<bundles_post_ra>
// kernel: tpu_custom_call.1
= control target key start
LH: loop header
LB: loop body
LE: loop exit
PB: predicated region body
PF: predicated region fallthrough
CT: control target
= control target key end

     0   :  { %7 = vsyncpa [#allocation3], 0  ;;  %s840_s0 = inlined_call_operand.hbm [shape: f32[2,8,128], index: 0, kind: input, shape index: {}]   ;;  %s841_s1 = inlined_call_operand.hbm [shape: f32[2,8,128], index: 1, kind: input, shape index: {}]   ;;  %s842_s2 = inlined_call_operand.hbm [shape: f32[2,2,8,128], index: 2, kind: output, shape index: {}]  }
   0x1   :  { %9 = vsyncpa [#allocation3 + $0x1], 0 }
   0x2   :  { %10 = vsyncpa [#allocation6], 0 }
   0x3   :  { %12 = vsyncpa [#allocation6 + $0x1], 0 }
   0x4   :  { %13 = vsyncpa [#allocation4], 0 }
   0x5   :  { %15 = vsyncpa [#allocation4 + $0x1], 0  ;;  %s617_s9 = smov 0   ;;  %s619_s10 = smov 0  }
   0x6   :  { %s621_s11 = smov 0   ;;  %s623_s12 = smov 0  }
   0x7   :  { %s625_s13 = smov 0   ;;  %s627_s14 = smov 0  }
   0x8 LB: > { %s357_s15 = sadd.s32 4294967295, %s595_s14   ;;  %s358_s16 = sadd.s32 4294967294, %s595_s14   ;;  %s595_s14 = sphi %s627_s14, %s21_s14   ;;  %s591_s13 = sphi %s625_s13, %s862_s13   ;;  %s587_s12 = sphi %s623_s12, %s861_s12   ;;  %s583_s11 = sphi %s621_s11, %s860_s11   ;;  %s579_s10 = sphi %s619_s10, %s859_s10   ;;  %s575_s9 = sphi %s617_s9, %s858_s9  }
   0x9   : > { %s33_s17 = sadd.s32 1, %s591_s13  ;;  %s42_s18 = sadd.s32 1, %s583_s11 }
   0xa   : > { %p35_p0 = scmp.ge.s32.totalorder %s33_s17, 2  ;;  %p49_p1 = scmp.ne.s32.totalorder %s583_s11, %s579_s10 }
   0xb   : > { %p50_p2 = scmp.eq.s32.totalorder %s595_s14, 0  ;;  %p55_p3 = scmp.ne.s32.totalorder %s579_s10, %s575_s9 }
   0xc   : > { %s864_s17 = smov (%p35_p0, %s33_s17), 0  ;;  %p56_p5 = scmp.eq.s32.totalorder %s357_s15, 0 }
   0xd   : > { %p658_p4 = por %p50_p2, %p49_p1  ;;  %s37_s20 = ssub.s32 %s591_s13, %s864_s17 }
   0xe   : > { %p107_p6 = scmp.eq.s32.totalorder %s357_s15, 1  ;;  %p40_p7 = scmp.eq.s32.totalorder %s37_s20, 0 }
   0xf   : > { %p664_p8 = por %p56_p5, %p55_p3  ;;  %p113_p10 = scmp.eq.s32.totalorder %s358_s16, 1 }
  0x10   : > { %p668_p9 = por %p107_p6, %p49_p1  ;;  %p394_p13 = scmp.lt.s32.totalorder %s595_s14, 2 }
  0x11   : > { %s846_s21 = scalar_select %p664_p8, 1, 0 }
  0x12   : > { %s847_s22 = scalar_select %p668_p9, 1, 0 }
  0x13   : > { %s673_s23 = scalar_select %p40_p7, %s583_s11, %s42_s18  }
  0x14   : > { %p675_p11 = por %p113_p10, %p55_p3  ;;  %s682_s25 = sand.u32 1, %s583_s11  }
  0x15   : > { %s361_s26 = sshll.u32 %s682_s25, 3  ;;  %s362_s27 = sshll.u32 %s591_s13, 7 }
  0x16   : > { %s848_s24 = scalar_select %p675_p11, 1, 0 }
  0x17   : > { %s691_s30 = scalar_lea.hbm %s840_s0, %s362_s27  ;;  %s137_s3 = scalar_lea.vmem [#allocation2], %s361_s26 }
  0x18   : > { %s145_s4 = sshll.u32 %s137_s3, 4  ;;  %p699_p0 = pnand %p394_p13, %p658_p4  ;;  %s695_s4 = int_to_ptr.vmem [resolvable:$true] %s145_s4 }
  0x19   : > { %s134_s6 = scalar_lea.sflag [#allocation3], %s682_s25  ;;  %s449_s7 = scalar_lea.hbm %s691_s30, 128 }
  0x1a   : > { %p450_p3 = scmp.ne.s32.totalorder %s691_s30, %s449_s7  ;;  %p451_p5 = pneg %p699_p0 }
  0x1b   : > { %s454_s16 = scalar_lea.hbm %s840_s0, 256  ;;  %p455_p4 = scmp.lt.u32.totalorder %s691_s30, %s840_s0 }
  0x1c   : > { %p452_p6 = pnand %p451_p5, %p450_p3  ;;  %p456_p10 = scmp.lt.u32.totalorder %s454_s16, %s449_s7 }
  0x1d   : > { %p458_p12 = scmp.lt.u32.totalorder %s449_s7, %s691_s30 }
  0x1e   : > { %p453_p7 = pneg %p452_p6  ;;  %p457_p13 = por %p456_p10, %p455_p4 }
  0x20   : > { %p459_p1 = por %p458_p12, %p457_p13 }
  0x22   : > { %p460_p2 = pnand %p459_p1, %p453_p7 }
  0x24   : > { %463 = shalt.err (!%p460_p2)
}
  0x25   : > { %s464_s20 = scalar_lea.vmem %s695_s4, 128  ;;  %s597_s28 = smov [#allocation2]  }
  0x26   : > { %p465_p3 = scmp.ne.s32.totalorder %s695_s4, %s464_s20  ;;  %s469_s29 = sshll.u32 %s597_s28, 4  ;;  %s470_s29 = int_to_ptr.vmem [resolvable:$false] %s469_s29 }
  0x27   : > { %s471_s3 = scalar_lea.vmem %s470_s29, 256  ;;  %p472_p9 = scmp.lt.s32.totalorder %s695_s4, %s470_s29 }
  0x28   : > { %p467_p6 = pnand %p465_p3, %p451_p5  ;;  %p473_p4 = scmp.lt.s32.totalorder %s471_s3, %s464_s20 }
  0x2a   : > { %p468_p11 = pneg %p467_p6  ;;  %p474_p10 = por %p473_p4, %p472_p9 }
  0x2c   : > { %p475_p12 = pnand %p474_p10, %p468_p11 }
  0x2e   : > { %478 = shalt.err (!%p475_p12)
}
  0x2f   : > { %386 = dma.hbm_to_vmem [thread:$0]  (!%p699_p0), %s691_s30, 128, %s695_s4, %s134_s6  }
  0x30   : > { %p850_p1 = scmp.lt.s32.totalorder %s595_s14, 3  ;;  %p851_p2 = scmp.ge.s32.totalorder %s595_s14, 1 }
  0x31   : > { %s744_s16 = scalar_lea.hbm %s841_s1, %s362_s27  ;;  %s156_s18 = scalar_lea.vmem [#allocation5], %s361_s26 }
  0x32   : > { %p735_p7 = pnand %p851_p2, %p850_p1  ;;  %s164_s19 = sshll.u32 %s156_s18, 4  ;;  %s165_s19 = int_to_ptr.vmem [resolvable:$true] %s164_s19 }
  0x33   : > { %s153_s30 = scalar_lea.sflag [#allocation6], %s682_s25  ;;  %s479_s4 = scalar_lea.hbm %s744_s16, 128 }
  0x34   : > { %s852_s7 = scalar_select %p735_p7, 1, 0 }
  0x35   : > { %p480_p9 = scmp.ne.s32.totalorder %s744_s16, %s479_s4  ;;  %s484_s27 = scalar_lea.hbm %s841_s1, 256 }
  0x36   : > { %p485_p3 = scmp.lt.u32.totalorder %s744_s16, %s841_s1  ;;  %p486_p6 = scmp.lt.u32.totalorder %s484_s27, %s479_s4 }
  0x37   : > { %p482_p11 = pnand %p480_p9, %p451_p5  ;;  %p488_p10 = scmp.lt.u32.totalorder %s479_s4, %s744_s16 }
  0x38   : > { %p487_p4 = por %p486_p6, %p485_p3 }
  0x39   : > { %p483_p13 = pneg %p482_p11 }
  0x3a   : > { %p489_p12 = por %p488_p10, %p487_p4 }
  0x3c   : > { %p490_p1 = pnand %p489_p12, %p483_p13 }
  0x3e   : > { %493 = shalt.err (!%p490_p1)
}
  0x3f   : > { %s494_s25 = scalar_lea.vmem %s165_s19, 128  ;;  %s598_s26 = smov [#allocation5]  }
  0x40   : > { %p495_p2 = scmp.ne.s32.totalorder %s165_s19, %s494_s25  ;;  %s499_s3 = sshll.u32 %s598_s26, 4  ;;  %s500_s3 = int_to_ptr.vmem [resolvable:$false] %s499_s3 }
  0x41   : > { %s501_s8 = scalar_lea.vmem %s500_s3, 256  ;;  %p502_p8 = scmp.lt.s32.totalorder %s165_s19, %s500_s3 }
  0x42   : > { %p497_p9 = pnand %p495_p2, %p451_p5  ;;  %p503_p7 = scmp.lt.s32.totalorder %s501_s8, %s494_s25 }
  0x44   : > { %p498_p11 = pneg %p497_p9  ;;  %p504_p3 = por %p503_p7, %p502_p8 }
  0x46   : > { %p505_p6 = pnand %p504_p3, %p498_p11 }
  0x48   : > { %508 = shalt.err (!%p505_p6)
}
  0x49   : > { %389 = dma.hbm_to_vmem [thread:$0]  (!%p699_p0), %s744_s16, 128, %s165_s19, %s153_s30  }
  0x4a   : > { %p853_p13 = scmp.ne.s32.totalorder %s852_s7, 0 }
  0x4b   : > { %s771_s15 = sand.u32 (!%p853_p13), 1, %s579_s10   ;;  %p854_p5 = scmp.ne.s32.totalorder (!%p853_p13), %s846_s21, 0 }
  0x4c   : > { %173 = sbr.rel (%p853_p13) target bundleno = 121 (0x79), region = 28  ;;  %s366_s18 = sshll.u32 (!%p853_p13), %s771_s15, 3 }
  0x4d   : > { %s176_s4 = scalar_lea.sflag (!%p853_p13), [#allocation3], %s771_s15  ;;  %s179_s6 = scalar_lea.vmem (!%p853_p13), [#allocation2], %s366_s18 }
  0x53   : > { %562 = dma.done.wait (%p854_p5), %s176_s4, 128  }
  0x54   : > { %564 = vsyncadd (%p854_p5), %s176_s4, 4294967168  ;;  %s185_s5 = scalar_lea.sflag [#allocation6], %s771_s15  ;;  %s188_s16 = scalar_lea.vmem [#allocation5], %s366_s18 }
  0x55   : > { %566 = dma.done.wait (%p854_p5), %s185_s5, 128  }
  0x56   : > { %568 = vsyncadd (%p854_p5), %s185_s5, 4294967168  ;;  %v220_v0 = vld [vmem:[%s179_s6] sm:$0xff]  ;;  %s368_s7 = sshll.u32 %s771_s15, 4  ;;  %v221_v4 = vld [vmem:[%s188_s16] sm:$0xff]  ;;  %s376_s19 = sshll.u32 %s587_s12, 8 }
  0x57   : > { %v222_v1 = vmul.f32 0.5, %v220_v0  ;;  %s213_s30 = scalar_lea.vmem [#allocation7], %s368_s7  ;;  %s789_s28 = scalar_lea.hbm %s842_s2, %s376_s19 }
  0x58   : > { %s251_s20 = sshll.u32 %s213_s30, 4  ;;  %s238_s29 = scalar_lea.sflag [#allocation4], %s771_s15  ;;  %s791_s20 = int_to_ptr.vmem [resolvable:$true] %s251_s20 }
  0x59   : > { %447 = vtanh.f32 %v222_v1  ;;  %s509_s25 = scalar_lea.vmem %s791_s20, 256  ;;  %p855_p0 = scmp.ne.s32.totalorder %s847_s22, 0 }
  0x5a   : > { %p510_p8 = scmp.ne.s32.totalorder %s791_s20, %s509_s25  ;;  %s599_s12 = smov [#allocation7]  }
  0x5b   : > { %s513_s26 = sshll.u32 %s599_s12, 4  ;;  %s514_s26 = int_to_ptr.vmem [resolvable:$false] %s513_s26 }
  0x5c   : > { %p511_p7 = pnand %p510_p8, %p855_p0  ;;  %s515_s3 = scalar_lea.vmem %s514_s26, 512 }
  0x5d   : > { %p516_p10 = scmp.lt.s32.totalorder %s791_s20, %s514_s26  ;;  %p517_p12 = scmp.lt.s32.totalorder %s515_s3, %s509_s25 }
  0x5e   : > { %p512_p4 = pneg %p511_p7 }
  0x5f   : > { %p518_p1 = por %p517_p12, %p516_p10 }
  0x61   : > { %p519_p2 = pnand %p518_p1, %p512_p4 }
  0x63   : > { %v448_v2 = vpop.eup %447 }
  0x64   : > { %v224_v3 = vadd.f32 1.0, %v448_v2 }
  0x66   : > { %v225_v5 = vmul.f32 0.5, %v224_v3 }
  0x68   : > { %v226_v6 = vmul.f32 %v225_v5, %v221_v4  ;;  %v227_v7 = vadd.f32 %v225_v5, %v221_v4 }
  0x6a   : > { %232 = vst [vmem:[%s213_s30] sm:$0xff] %v226_v6  ;;  %370 = vst [vmem:[%s213_s30 + $0x8] sm:$0xff] %v227_v7 }
  0x6b   : > { %522 = shalt.err (!%p519_p2)
}
  0x6c   : > { %s523_s8 = scalar_lea.hbm %s789_s28, 256  ;;  %s527_s6 = scalar_lea.hbm %s842_s2, 512 }
  0x6d   : > { %p524_p9 = scmp.ne.s32.totalorder %s789_s28, %s523_s8  ;;  %p528_p6 = scmp.lt.u32.totalorder %s789_s28, %s842_s2 }
  0x6e   : > { %p529_p13 = scmp.lt.u32.totalorder %s527_s6, %s523_s8  ;;  %p531_p8 = scmp.lt.u32.totalorder %s523_s8, %s789_s28 }
  0x6f   : > { %p525_p11 = pnand %p524_p9, %p855_p0 }
  0x70   : > { %p530_p5 = por %p529_p13, %p528_p6 }
  0x71   : > { %p526_p3 = pneg %p525_p11 }
  0x72   : > { %p532_p7 = por %p531_p8, %p530_p5 }
  0x74   : > { %p533_p4 = pnand %p532_p7, %p526_p3 }
  0x76   : > { %536 = shalt.err (!%p533_p4)
}
  0x77   : > { %s600_s7 = smov 128   ;;  %s601_s19 = smov 8  }
  0x78   : > { %381 = dma.vmem_to_hbm [thread:$0]  (%p855_p0), %s791_s20, 256, %s789_s28, %s238_s29, %s600_s7, %s600_s7, %s601_s19  }
  0x79 PF: > { %s266_s30 = sand.u32 1, %s575_s9   ;;  %p856_p10 = scmp.ne.s32.totalorder %s848_s24, 0 }
  0x7a   : > { %p857_p12 = scmp.ge.s32.totalorder %s595_s14, 2  ;;  %s267_s27 = scalar_lea.sflag [#allocation4], %s266_s30 }
  0x7c   : > { %p391_p1 = pnand %p857_p12, %p856_p10 }
  0x7e   : > { %570 = dma.done.wait (!%p391_p1), %s267_s27, 256  }
  0x7f   : > { %572 = vsyncadd (!%p391_p1), %s267_s27, 4294967040  ;;  %s21_s14 = sadd.s32 1, %s595_s14   ;;  %s858_s9 = smov %s579_s10 }
  0x80   : > { %p18_p2 = scmp.ge.s32.totalorder %s21_s14, 4   ;;  %s859_s10 = smov %s583_s11 }
  0x81   : > { %s860_s11 = smov %s673_s23  ;;  %s861_s12 = smov %s591_s13 }
  0x82   : > { %s862_s13 = smov %s864_s17  ;;  %20 = sbr.rel (!%p18_p2) target bundleno = 8 (0x8), region = 91 }
  0x89   :  { %272 = vsyncpa [#allocation3], 1 }
  0x8a   :  { %274 = vsyncpa [#allocation3 + $0x1], 1 }
  0x8b   :  { %275 = vsyncpa [#allocation6], 1 }
  0x8c   :  { %277 = vsyncpa [#allocation6 + $0x1], 1 }
  0x8d   :  { %278 = vsyncpa [#allocation4], 1 }
  0x8e   :  { %280 = vsyncpa [#allocation4 + $0x1], 1 }

</bundles_post_ra>
